<compile_context>
chip_gen: v7x
topology: tpu7x:2x2x1
jax: 0.10.0
libtpu: 0.0.40
codegen_flags: <defaults>
</compile_context>

<pallas_src>
import jax
import jax.numpy as jnp
from jax.experimental import pallas as pl
from jax.experimental.pallas import tpu as pltpu

LANE = 128
VMEM_LIMIT = 32 * 1024 * 1024  # safe on v5e / v6e / v7x


def _round_up(x, m):
    return ((x + m - 1) // m) * m


# ---------------------------------------------------------------------------
# Pallas kernels
# ---------------------------------------------------------------------------
def _mask_composite_kernel(img_ref, mask_ref, out_ref):
    # img: (1, C, TW), mask: (1, 1, TW) -> broadcast over channels in-kernel.
    img = img_ref[...]
    m = mask_ref[...]
    out_ref[...] = img * (1.0 - m) + m


def _matmul_tanh_kernel(p_ref, w_ref, o_ref, acc_ref):
    # Tiled (TM, TK) @ (TK, TN) with f32 VMEM accumulator over the K grid axis.
    @pl.when(pl.program_id(2) == 0)
    def _():
        acc_ref[...] = jnp.zeros_like(acc_ref)

    acc_ref[...] += jnp.dot(p_ref[...], w_ref[...],
                            preferred_element_type=jnp.float32)

    @pl.when(pl.program_id(2) == pl.num_programs(2) - 1)
    def _():
        o_ref[...] = jnp.tanh(acc_ref[...]).astype(o_ref.dtype)


def _fused_diff_kernel(*refs):
    # refs = (orig_1..orig_n, masked_1..masked_n, out_1..out_n)
    n = len(refs) // 3
    for a_ref, b_ref, o_ref in zip(refs[:n], refs[n:2 * n], refs[2 * n:]):
        o_ref[...] = a_ref[...] - b_ref[...]


# ---------------------------------------------------------------------------
# Glue helpers (plain JAX: reshape / pad / im2col only)
# ---------------------------------------------------------------------------
def _flatten_lane(x):
    """Flatten to a lane-dense (rows, 128) view; returns (2d, orig_size)."""
    n = x.size
    pad = (-n) % LANE
    flat = jnp.pad(x.reshape(-1), (0, pad))
    return flat.reshape(flat.size // LANE, LANE), n


def _pick_spatial_tile(total, cap=65536):
    """Largest multiple of LANE that divides `total`, at most `cap`."""
    best = LANE
    t = LANE
    limit = min(total, cap)
    while t <= limit:
        if total % t == 0:
            best = t
        t += LANE
    return best


def _im2col_3x3(x):
    """x: (B, C, H, W) -> patches (B*H*W, C*9), pad=1 conv patch extraction."""
    B, C, H, W = x.shape
    xp = jnp.pad(x, ((0, 0), (0, 0), (1, 1), (1, 1)))
    cols = []
    for di in range(3):
        for dj in range(3):
            cols.append(xp[:, :, di:di + H, dj:dj + W])
    patches = jnp.stack(cols, axis=2)                    # (B, C, 9, H, W)
    patches = patches.transpose(0, 3, 4, 1, 2)           # (B, H, W, C, 9)
    return patches.reshape(B * H * W, C * 9)


# ---------------------------------------------------------------------------
# Mask composite: images * (1 - masks) + masks   (mask broadcast in-kernel)
# ---------------------------------------------------------------------------
def mask_composite(images, masks):
    B, C, H, W = images.shape
    HW = H * W
    pad = (-HW) % LANE
    HWp = HW + pad

    img3 = images.reshape(B, C, HW)
    msk3 = masks.reshape(B, 1, HW).astype(images.dtype)
    if pad:
        img3 = jnp.pad(img3, ((0, 0), (0, 0), (0, pad)))
        msk3 = jnp.pad(msk3, ((0, 0), (0, 0), (0, pad)))

    TW = _pick_spatial_tile(HWp)
    out3 = pl.pallas_call(
        _mask_composite_kernel,
        out_shape=jax.ShapeDtypeStruct((B, C, HWp), images.dtype),
        grid=(B, HWp // TW),
        in_specs=[
            pl.BlockSpec((1, C, TW), lambda b, j: (b, 0, j)),
            pl.BlockSpec((1, 1, TW), lambda b, j: (b, 0, j)),
        ],
        out_specs=pl.BlockSpec((1, C, TW), lambda b, j: (b, 0, j)),
        compiler_params=pltpu.CompilerParams(
            dimension_semantics=("parallel", "parallel"),
            vmem_limit_bytes=VMEM_LIMIT),
    )(img3, msk3)

    return out3[:, :, :HW].reshape(B, C, H, W)


# ---------------------------------------------------------------------------
# Stand-in StudentGenerator: single 3x3 conv (3->3, pad=1) + tanh
# ---------------------------------------------------------------------------
def student_generator(x, weight, bias):
    """x: (B, C, H, W) NCHW. weight: (Cout, Cin, 3, 3). bias: (Cout,)."""
    B, C, H, W = x.shape
    Cout = weight.shape[0]
    K = C * 9

    patches = _im2col_3x3(x).astype(jnp.float32)          # (M, K)
    M = patches.shape[0]

    # Lane-dense padding: fold bias in as an extra "ones" column, pad K and N
    # up to multiples of 128 so MXU tiles are dense and output stores are
    # unmasked 128-lane stores.
    KP = _round_up(K + 1, LANE)
    NP = _round_up(Cout, LANE)
    TM = 256 if M >= 256 else _round_up(M, 8)
    Mp = _round_up(M, TM)
    TK, TN = LANE, LANE

    p_ext = jnp.concatenate([patches, jnp.ones((M, 1), patches.dtype)], axis=1)
    p_pad = jnp.pad(p_ext, ((0, Mp - M), (0, KP - (K + 1))))
    w_ext = jnp.concatenate(
        [weight.reshape(Cout, K).T.astype(jnp.float32),
         bias.reshape(1, Cout).astype(jnp.float32)], axis=0)
    w_pad = jnp.pad(w_ext, ((0, KP - (K + 1)), (0, NP - Cout)))

    out_pad = pl.pallas_call(
        _matmul_tanh_kernel,
        out_shape=jax.ShapeDtypeStruct((Mp, NP), jnp.float32),
        grid=(Mp // TM, NP // TN, KP // TK),
        in_specs=[
            pl.BlockSpec((TM, TK), lambda i, j, k: (i, k)),
            pl.BlockSpec((TK, TN), lambda i, j, k: (k, j)),
        ],
        out_specs=pl.BlockSpec((TM, TN), lambda i, j, k: (i, j)),
        scratch_shapes=[pltpu.VMEM((TM, TN), jnp.float32)],
        compiler_params=pltpu.CompilerParams(
            dimension_semantics=("parallel", "parallel", "arbitrary"),
            vmem_limit_bytes=VMEM_LIMIT),
    )(p_pad, w_pad)

    out2 = out_pad[:M, :Cout]
    out = out2.reshape(B, H, W, Cout).transpose(0, 3, 1, 2)   # back to NCHW
    layer = {}  # TODO(synk): intermediate feature dict of StudentGenerator unknown
    return out, layer


# ---------------------------------------------------------------------------
# All six layer diffs in ONE pallas_call (12 inputs, 6 outputs, lane-dense)
# ---------------------------------------------------------------------------
def fused_layer_diffs(orig_list, masked_list):
    a2d, b2d, meta = [], [], []
    for a, b in zip(orig_list, masked_list):
        a2, n = _flatten_lane(a)
        b2, _ = _flatten_lane(b)
        a2d.append(a2)
        b2d.append(b2)
        meta.append((a.shape, a.dtype, n, a2.shape[0]))

    def full_spec(rows):
        return pl.BlockSpec((rows, LANE), lambda i: (0, 0))

    in_specs = [full_spec(m[3]) for m in meta] + [full_spec(m[3]) for m in meta]
    out_specs = tuple(full_spec(m[3]) for m in meta)
    out_shape = tuple(jax.ShapeDtypeStruct((m[3], LANE), m[1]) for m in meta)

    # Tensors are tiny (<=8K elems each) so a single grid step is the right
    # choice: one launch instead of six, everything fits VMEM comfortably.
    outs = pl.pallas_call(
        _fused_diff_kernel,
        out_shape=out_shape,
        grid=(1,),
        in_specs=in_specs,
        out_specs=out_specs,
        compiler_params=pltpu.CompilerParams(
            dimension_semantics=("arbitrary",),
            vmem_limit_bytes=VMEM_LIMIT),
    )(*a2d, *b2d)

    results = []
    for o2, (shape, _dtype, n, _rows) in zip(outs, meta):
        results.append(o2.reshape(-1)[:n].reshape(shape))
    return results


# ---------------------------------------------------------------------------
# StudentModel.forward
# ---------------------------------------------------------------------------
def student_model_forward(images, masks, orignal_layer, masked_layer,
                          gen_weight, gen_bias):
    # images_masked = images * (1 - masks).float() + masks
    images_masked = mask_composite(images, masks)

    outputs, layer = student_generator(images_masked, gen_weight, gen_bias)

    orig = [orignal_layer[f'layer{i}'] for i in range(1, 7)]
    mskd = [masked_layer[f'layer{i}'] for i in range(1, 7)]
    diffs = fused_layer_diffs(orig, mskd)

    return (outputs, layer) + tuple(diffs)


# ---------------------------------------------------------------------------
# Main
# ---------------------------------------------------------------------------
if __name__ == "__main__":
    key = jax.random.PRNGKey(0)
    keys = jax.random.split(key, 20)

    B, C, H, W = 2, 3, 16, 16
    images = jax.random.uniform(keys[0], (B, C, H, W), dtype=jnp.float32)
    masks = (jax.random.uniform(keys[1], (B, 1, H, W)) > 0.5).astype(jnp.float32)

    layer_shapes = {
        'layer1': (B, 64, 8, 8),
        'layer2': (B, 128, 4, 4),
        'layer3': (B, 256, 2, 2),
        'layer4': (B, 512, 1, 1),
        'layer5': (B, 512, 1, 1),
        'layer6': (B, 512, 1, 1),
    }
    orignal_layer = {
        k: jax.random.normal(keys[2 + i], s, dtype=jnp.float32)
        for i, (k, s) in enumerate(layer_shapes.items())
    }
    masked_layer = {
        k: jax.random.normal(keys[8 + i], s, dtype=jnp.float32)
        for i, (k, s) in enumerate(layer_shapes.items())
    }

    # Deterministic generator parameters (Conv2d(3, 3, 3, padding=1)).
    gen_weight = 0.1 * jax.random.normal(keys[14], (3, 3, 3, 3), dtype=jnp.float32)
    gen_bias = 0.01 * jax.random.normal(keys[15], (3,), dtype=jnp.float32)

    result = student_model_forward(images, masks, orignal_layer, masked_layer,
                                   gen_weight, gen_bias)
    (outputs, layer, d1, d2, d3, d4, d5, d6) = result
    jax.block_until_ready((outputs, d1, d2, d3, d4, d5, d6))

    # Sanity checks against pure-JAX references.
    masks_b = jnp.broadcast_to(masks, images.shape)
    ref_masked = images * (1.0 - masks_b) + masks_b
    im_masked = mask_composite(images, masks)
    assert jnp.allclose(im_masked, ref_masked, atol=1e-6)

    w_flat = gen_weight.reshape(3, 27).T
    ref_pre = jnp.dot(_im2col_3x3(ref_masked), w_flat,
                      precision=jax.lax.Precision.HIGHEST) + gen_bias
    ref_out = jnp.tanh(ref_pre).reshape(B, H, W, 3).transpose(0, 3, 1, 2)
    assert outputs.shape == images.shape
    assert jnp.allclose(outputs, ref_out, atol=2e-3)

    for i, d in enumerate((d1, d2, d3, d4, d5, d6), start=1):
        ref_d = orignal_layer[f'layer{i}'] - masked_layer[f'layer{i}']
        assert d.shape == ref_d.shape
        assert jnp.allclose(d, ref_d, atol=1e-6)

    print("KERNEL_OK")
</pallas_src>

<mosaic_0001>
module attributes {stable_mosaic.version = 11 : i64} {
  func.func @_mask_composite_kernel(%arg0: i32, %arg1: i32, %arg2: memref<1x3x256xf32, #tpu.memory_space<vmem>>, %arg3: memref<1x1x256xf32, #tpu.memory_space<vmem>>, %arg4: memref<1x3x256xf32, #tpu.memory_space<vmem>>) attributes {dimension_semantics = [#tpu.dimension_semantics<parallel>, #tpu.dimension_semantics<parallel>], iteration_bounds = array<i64: 2, 1>, scalar_prefetch = 0 : i64, scratch_operands = 0 : i64, tpu.core_type = #tpu.core_type<tc>, window_params = [{transform_indices = @transform_0, window_bounds = array<i64: 1, 3, 256>}, {transform_indices = @transform_1, window_bounds = array<i64: 1, 1, 256>}, {transform_indices = @transform_2, window_bounds = array<i64: 1, 3, 256>}]} {
    %c0 = arith.constant 0 : index
    %c0_0 = arith.constant 0 : index
    %c0_1 = arith.constant 0 : index
    %0 = vector.load %arg2[%c0, %c0_0, %c0_1] : memref<1x3x256xf32, #tpu.memory_space<vmem>>, vector<1x3x256xf32>
    %c0_2 = arith.constant 0 : index
    %c0_3 = arith.constant 0 : index
    %c0_4 = arith.constant 0 : index
    %1 = vector.load %arg3[%c0_2, %c0_3, %c0_4] : memref<1x1x256xf32, #tpu.memory_space<vmem>>, vector<1x1x256xf32>
    %cst = arith.constant 1.000000e+00 : f32
    %2 = vector.broadcast %cst : f32 to vector<1x1x256xf32>
    %3 = arith.subf %2, %1 : vector<1x1x256xf32>
    %4 = vector.broadcast %3 : vector<1x1x256xf32> to vector<1x3x256xf32>
    %5 = arith.mulf %0, %4 : vector<1x3x256xf32>
    %6 = vector.broadcast %1 : vector<1x1x256xf32> to vector<1x3x256xf32>
    %7 = arith.addf %5, %6 : vector<1x3x256xf32>
    %c0_5 = arith.constant 0 : index
    %c0_6 = arith.constant 0 : index
    %c0_7 = arith.constant 0 : index
    %8 = vector.load %arg4[%c0_5, %c0_6, %c0_7] : memref<1x3x256xf32, #tpu.memory_space<vmem>>, vector<1x3x256xf32>
    tpu.vector_store %arg4[%c0_5, %c0_6, %c0_7], %7 {strides = array<i32>} : memref<1x3x256xf32, #tpu.memory_space<vmem>>, vector<1x3x256xf32>,
    return
  }
  func.func @transform_0(%arg0: i32, %arg1: i32) -> (i32, i32, i32) {
    %c0_i32 = arith.constant 0 : i32
    %c0_i32_0 = arith.constant 0 : i32
    return %arg0, %c0_i32, %arg1 : i32, i32, i32
  }
  func.func @transform_1(%arg0: i32, %arg1: i32) -> (i32, i32, i32) {
    %c0_i32 = arith.constant 0 : i32
    %c0_i32_0 = arith.constant 0 : i32
    return %arg0, %c0_i32, %arg1 : i32, i32, i32
  }
  func.func @transform_2(%arg0: i32, %arg1: i32) -> (i32, i32, i32) {
    %c0_i32 = arith.constant 0 : i32
    %c0_i32_0 = arith.constant 0 : i32
    return %arg0, %c0_i32, %arg1 : i32, i32, i32
  }
}

</mosaic_0001>

<bundles_post_ra>
// kernel: tpu_custom_call.1
= control target key start
LH: loop header
LB: loop body
LE: loop exit
PB: predicated region body
PF: predicated region fallthrough
CT: control target
= control target key end

     0   :  { %s423_s9 = smov 0   ;;  %s425_s10 = smov 0   ;;  %s459_s0 = inlined_call_operand.vmem [shape: f32[2,3,256], index: 0, kind: input, shape index: {}]   ;;  %s460_s1 = inlined_call_operand.vmem [shape: f32[2,1,256], index: 1, kind: input, shape index: {}]   ;;  %s461_s2 = inlined_call_operand.vmem [shape: f32[2,3,256], index: 2, kind: output, shape index: {}]  }
   0x1   :  { %s427_s11 = smov 0  }
   0x2 LB: > { %s24_s12 = sadd.s32 1, %s402_s10  ;;  %p350_p0 = scmp.ge.s32.totalorder %s406_s11, 1  ;;  %s406_s11 = sphi %s427_s11, %s12_s11   ;;  %s402_s10 = sphi %s425_s10, %s463_s10   ;;  %s398_s9 = sphi %s423_s9, %s462_s9  }
   0x3   : > { %p26_p1 = scmp.ge.s32.totalorder %s24_s12, 2  ;;  %p149_p2 = scmp.lt.s32.totalorder %s406_s11, 3 }
   0x5   : > { %s465_s12 = smov (%p26_p1, %s24_s12), 0  ;;  %p150_p3 = pnand %p350_p0, %p149_p2 }
   0x6   : > { %p188_p4 = scmp.lt.s32.totalorder (!%p150_p3), %s398_s9, 1  ;;  %v220_v0 = vlaneseq (!%p150_p3) }
   0x7   : > { %153 = sbr.rel (%p150_p3) target bundleno = 29 (0x1d), region = 28 }
   0x8   : > { %v221_v1 = vshrl.u32 (!%p150_p3), %v220_v0, 7 }
   0xa   : > { %v222_v2 = vsub.s32 (!%p150_p3), 0, %v221_v1  ;;  %v226_v3 = vsub.s32 (!%p150_p3), 1, %v221_v1 }
   0xe   : > { %s467_s9 = smov (!%p188_p4, %s398_s9), 1 }
   0xf   : > { %s358_s13 = sshll.u32 %s467_s9, 3  ;;  %s353_s14 = sshll.u32 %s467_s9, 1 }
  0x10   : > { %s204_s17 = scalar_lea.vmem %s460_s1, %s353_s14  ;;  %s195_s20 = scalar_lea.vmem %s459_s0, %s358_s13 }
  0x11   : > { %v217_v4 = vld [vmem:[%s204_s17] sm:$0x3]  ;;  %s214_s23 = scalar_lea.vmem %s461_s2, %s358_s13 }
  0x12   : > { %v218_v5 = vsub.f32 1.0, %v217_v4  ;;  %v235_v6 = vrot.slane %v217_v4, %v222_v2  ;;  %v239_v7 = vrot.slane %v217_v4, %v226_v3  ;;  %v216_v10 = vld [vmem:[%s195_s20] sm:$0x77] }
  0x14   : > { %v223_v8 = vrot.slane %v218_v5, %v222_v2  ;;  %v227_v9 = vrot.slane %v218_v5, %v226_v3  ;;  %v240_v12 = vcombine.low %v235_v6, %v239_v7 }
  0x16   : > { %v228_v11 = vcombine.low %v223_v8, %v227_v9 }
  0x18   : > { %v230_v13 = vmul.f32 %v228_v11, %v216_v10 }
  0x1a   : > { %v242_v14 = vadd.f32 %v240_v12, %v230_v13 }
  0x1c   : > { %243 = vst [vmem:[%s214_s23] sm:$0x77] %v242_v14 }
  0x1d PF: > { %s12_s11 = sadd.s32 1, %s406_s11   ;;  %s462_s9 = smov %s402_s10 }
  0x1e   : > { %p9_p5 = scmp.ge.s32.totalorder %s12_s11, 4   ;;  %s463_s10 = smov %s465_s12 }
  0x20   :  { %11 = sbr.rel (!%p9_p5) target bundleno = 2 (0x2), region = 61 }

</bundles_post_ra>
